<compile_context>
chip_gen: v7x
topology: tpu7x:2x2x1
jax: 0.10.0
libtpu: 0.0.40
codegen_flags: <defaults>
</compile_context>

<pallas_src>
import functools

import jax
import jax.numpy as jnp
from jax.experimental import pallas as pl
from jax.experimental.pallas import tpu as pltpu

_LANE = 128
_SUBLANE = 8
_EPS = 1e-5
_VMEM_CEIL = 64 << 20  # v7x physical VMEM per TensorCore (v5e/v6e have 128 MiB)


def _round_up(v, m):
    return (v + m - 1) // m * m


def _pad2d(a, rows, cols):
    return jnp.pad(a, ((0, rows - a.shape[0]), (0, cols - a.shape[1])))


def _largest_divisor_tile(n, candidates):
    for t in candidates:
        if t <= n and n % t == 0:
            return t
    raise ValueError(f"no tile from {candidates} divides {n}")


def _vmem_budget(working_set_bytes):
    # Double-buffered working set + slack, clamped to the v7x physical ceiling.
    return int(min(max(2 * working_set_bytes + (4 << 20), 32 << 20), _VMEM_CEIL))


# --------------------------------------------------------------------------
# Propagation kernels:  out = A @ x (+ bias)
# --------------------------------------------------------------------------
def _spmm_resident_kernel(a_ref, x_ref, o_ref):
    # Activations fully resident; one (row_tile, N) panel of A per grid step.
    o_ref[...] = jnp.dot(a_ref[...], x_ref[...],
                         preferred_element_type=jnp.float32).astype(o_ref.dtype)


def _spmm_resident_bias_kernel(a_ref, x_ref, b_ref, o_ref):
    acc = jnp.dot(a_ref[...], x_ref[...], preferred_element_type=jnp.float32)
    o_ref[...] = (acc + b_ref[...]).astype(o_ref.dtype)


def _spmm_ktiled_kernel(a_ref, x_ref, o_ref, acc_ref):
    @pl.when(pl.program_id(1) == 0)
    def _():
        acc_ref[...] = jnp.zeros_like(acc_ref)

    acc_ref[...] += jnp.dot(a_ref[...], x_ref[...],
                            preferred_element_type=jnp.float32)

    @pl.when(pl.program_id(1) == pl.num_programs(1) - 1)
    def _():
        o_ref[...] = acc_ref[...].astype(o_ref.dtype)


def _spmm_ktiled_bias_kernel(a_ref, x_ref, b_ref, o_ref, acc_ref):
    @pl.when(pl.program_id(1) == 0)
    def _():
        acc_ref[...] = jnp.zeros_like(acc_ref)

    acc_ref[...] += jnp.dot(a_ref[...], x_ref[...],
                            preferred_element_type=jnp.float32)

    @pl.when(pl.program_id(1) == pl.num_programs(1) - 1)
    def _():
        o_ref[...] = (acc_ref[...] + b_ref[...]).astype(o_ref.dtype)


def _propagate(adj_bf16, x_bf16, *, row_tile, k_tile, bias=None,
               out_dtype=jnp.bfloat16):
    """One propagation step: out = A @ x (+ bias).  A streamed in bf16 panels."""
    n = adj_bf16.shape[0]
    f = x_bf16.shape[1]
    r = n // row_tile
    kt = n // k_tile
    out_bytes = jnp.dtype(out_dtype).itemsize

    cost = pl.CostEstimate(
        flops=2 * n * n * f,
        transcendentals=0,
        bytes_accessed=int(n * n * 2 + (r if kt > 1 else 1) * n * f * 2
                           + n * f * out_bytes))

    if kt == 1:
        # Fast path: activations fully resident in VMEM, A streamed as
        # double-buffered (row_tile, n) panels; row panels split across cores.
        working = (2 * row_tile * n * 2 + n * f * 2
                   + 2 * row_tile * f * out_bytes + f * 4)
        in_specs = [pl.BlockSpec((row_tile, n), lambda i: (i, 0)),
                    pl.BlockSpec((n, f), lambda i: (0, 0))]
        operands = [adj_bf16, x_bf16]
        kernel = _spmm_resident_kernel
        if bias is not None:
            in_specs.append(pl.BlockSpec((1, f), lambda i: (0, 0)))
            operands.append(bias)
            kernel = _spmm_resident_bias_kernel
        return pl.pallas_call(
            kernel,
            out_shape=jax.ShapeDtypeStruct((n, f), out_dtype),
            grid=(r,),
            in_specs=in_specs,
            out_specs=pl.BlockSpec((row_tile, f), lambda i: (i, 0)),
            compiler_params=pltpu.CompilerParams(
                dimension_semantics=("parallel",),
                vmem_limit_bytes=_vmem_budget(working)),
            cost_estimate=cost,
        )(*operands)

    # Scalable path (huge N): 2-D grid over (row panels, K panels) with an
    # f32 VMEM accumulator.  Costs one extra x re-read per row panel
    # (~f/row_tile of A's traffic), but never needs x fully resident.
    working = (2 * row_tile * k_tile * 2 + 2 * k_tile * f * 2
               + 2 * row_tile * f * out_bytes + row_tile * f * 4 + f * 4)
    in_specs = [pl.BlockSpec((row_tile, k_tile), lambda i, k: (i, k)),
                pl.BlockSpec((k_tile, f), lambda i, k: (k, 0))]
    operands = [adj_bf16, x_bf16]
    kernel = _spmm_ktiled_kernel
    if bias is not None:
        in_specs.append(pl.BlockSpec((1, f), lambda i, k: (0, 0)))
        operands.append(bias)
        kernel = _spmm_ktiled_bias_kernel
    return pl.pallas_call(
        kernel,
        out_shape=jax.ShapeDtypeStruct((n, f), out_dtype),
        grid=(r, kt),
        in_specs=in_specs,
        out_specs=pl.BlockSpec((row_tile, f), lambda i, k: (i, 0)),
        scratch_shapes=[pltpu.VMEM((row_tile, f), jnp.float32)],
        compiler_params=pltpu.CompilerParams(
            dimension_semantics=("parallel", "arbitrary"),
            vmem_limit_bytes=_vmem_budget(working)),
        cost_estimate=cost,
    )(*operands)


# --------------------------------------------------------------------------
# Middle kernel: Linear(W1) -> BatchNorm(train stats) -> ReLU -> @ W2.
# --------------------------------------------------------------------------
def _hidden_kernel(x_ref, w1_ref, gamma_ref, beta_ref, w2_ref, o_ref, *,
                   n_rows, eps):
    # h = x @ W1.  The Linear bias b1 is exactly cancelled by the training-mode
    # BatchNorm mean subtraction, so it is dropped (dead VPU work otherwise).
    h = jnp.dot(x_ref[...], w1_ref[...], preferred_element_type=jnp.float32)

    # BatchNorm1d training-mode batch stats (biased variance), one-pass
    # sum / sum-of-squares folded into a single scale/shift.  Padded rows are
    # exact zeros, so summing over all rows and dividing by the REAL row count
    # gives exact statistics.
    inv_n = 1.0 / n_rows
    s1 = jnp.sum(h, axis=0, keepdims=True)
    s2 = jnp.sum(h * h, axis=0, keepdims=True)
    mean = s1 * inv_n
    var = jnp.maximum(s2 * inv_n - mean * mean, 0.0)
    scale = gamma_ref[...] * jax.lax.rsqrt(var + eps)   # EUP rsqrt
    shift = beta_ref[...] - mean * scale
    h = jnp.maximum(h * scale + shift, 0.0)             # BN + ReLU, f32 VPU

    # TODO(synk): Dropout is identity here (torch's training-mode RNG mask and
    # 1/(1-p) survivor scaling are not reproduced).

    # Reassociated output projection: emit z = h @ W2 now; the second A^power
    # propagation then runs on the narrower z.  Exact: A^p (h W2) == (A^p h) W2.
    o_ref[...] = jnp.dot(h.astype(jnp.bfloat16), w2_ref[...],
                         preferred_element_type=jnp.float32).astype(o_ref.dtype)


def _hidden_project(x_bf16, w1_bf16, gamma, beta, w2_bf16, *, n_real, eps):
    n_pad, fi = x_bf16.shape
    fh = w1_bf16.shape[1]
    fo = w2_bf16.shape[1]

    def full(shape):
        return pl.BlockSpec(shape, lambda: (0,) * len(shape))

    working = (n_pad * fi * 2 + fi * fh * 2 + fh * fo * 2
               + 2 * fh * 4 + n_pad * fh * 4 + n_pad * fo * 2)
    cost = pl.CostEstimate(
        flops=2 * n_pad * fi * fh + 2 * n_pad * fh * fo + 6 * n_pad * fh,
        transcendentals=fh,
        bytes_accessed=int(working))

    kernel = functools.partial(_hidden_kernel, n_rows=float(n_real), eps=eps)
    return pl.pallas_call(
        kernel,
        out_shape=jax.ShapeDtypeStruct((n_pad, fo), jnp.bfloat16),
        grid=(),
        in_specs=[full(x_bf16.shape), full(w1_bf16.shape), full(gamma.shape),
                  full(beta.shape), full(w2_bf16.shape)],
        out_specs=full((n_pad, fo)),
        compiler_params=pltpu.CompilerParams(
            vmem_limit_bytes=_vmem_budget(working)),
        cost_estimate=cost,
    )(x_bf16, w1_bf16, gamma, beta, w2_bf16)


# --------------------------------------------------------------------------
# Full NGCNCell forward.
# --------------------------------------------------------------------------
def ngcn_cell_forward(x, adj, w1_t, b1, gamma, beta, w2_t, b2, *,
                      power, row_tile=None, k_tile=None, eps=_EPS):
    """NGCNCell forward pass.

    x     : [N, input_dim]            f32 node features
    adj   : [N, N]                    f32 dense normalized adjacency
    w1_t  : [input_dim, hidden_dim]   hidden Linear weight (pre-transposed)
    b1    : [1, hidden_dim]           accepted for API parity; exactly
                                      cancelled by training-mode BN mean
    gamma, beta : [1, hidden_dim]     BatchNorm1d affine parameters
    w2_t  : [hidden_dim, output_dim]  output Linear weight (pre-transposed)
    b2    : [1, output_dim]
    """
    del b1  # exactly cancelled by the batch-mean subtraction (training-mode BN)

    assert power >= 1, "NGCNCell power must be >= 1"
    n, fin = x.shape
    fh = w1_t.shape[1]
    fout = w2_t.shape[1]

    n_pad = _round_up(n, _LANE)
    fi_p = _round_up(fin, _LANE)
    fh_p = _round_up(fh, _LANE)
    fo_p = _round_up(fout, _LANE)

    if row_tile is None:
        row_tile = _largest_divisor_tile(n_pad, (512, 256, 128))
    assert n_pad % row_tile == 0 and row_tile % _SUBLANE == 0

    if k_tile is None:
        # Keep activations fully resident unless they (plus a double-buffered
        # A panel) would blow VMEM; only then fall back to K-tiling.
        f_max = max(fi_p, fo_p)
        resident = (n_pad * f_max * 2 + 2 * row_tile * n_pad * 2
                    + 2 * row_tile * f_max * 4)
        if resident <= _VMEM_CEIL - (8 << 20):
            k_tile = n_pad
        else:
            k_tile = _largest_divisor_tile(n_pad, (2048, 1024, 512, 256, 128))
    assert n_pad % k_tile == 0 and k_tile % _LANE == 0

    # bf16 MXU operands (f32 accumulation inside the kernels); lane-dense
    # (multiple-of-128) node and feature dims so all stores are unmasked.
    # Padded rows/cols are exact zeros, so real results and BN stats are exact.
    adj_bf = _pad2d(adj, n_pad, n_pad).astype(jnp.bfloat16)
    xp = _pad2d(x, n_pad, fi_p).astype(jnp.bfloat16)
    w1p = _pad2d(w1_t, fi_p, fh_p).astype(jnp.bfloat16)
    w2p = _pad2d(w2_t, fh_p, fo_p).astype(jnp.bfloat16)
    gp = _pad2d(gamma, 1, fh_p).astype(jnp.float32)
    bp = _pad2d(beta, 1, fh_p).astype(jnp.float32)
    b2p = _pad2d(b2, 1, fo_p).astype(jnp.float32)

    # Phase 1:  x <- A^power @ x   (streamed, pipelined, parallel row panels).
    for _ in range(power):
        xp = _propagate(adj_bf, xp, row_tile=row_tile, k_tile=k_tile)

    # Hidden Linear + BatchNorm(train stats) + ReLU (+ identity dropout),
    # immediately projected by W2 (reassociation).
    z = _hidden_project(xp, w1p, gp, bp, w2p, n_real=n, eps=eps)

    # Phase 2:  z <- A^power @ z ; fuse the b2 add into the final step.
    for s in range(power):
        last = s == power - 1
        z = _propagate(adj_bf, z, row_tile=row_tile, k_tile=k_tile,
                       bias=b2p if last else None,
                       out_dtype=jnp.float32 if last else jnp.bfloat16)

    return z[:n, :fout]


# --------------------------------------------------------------------------
# References.
# --------------------------------------------------------------------------
def _reference_f32(x, adj, w1_t, b1, gamma, beta, w2_t, b2, *, power, eps=_EPS):
    """Pure-f32 JAX reference of the PyTorch module (training BN, no dropout)."""
    for _ in range(power):
        x = adj @ x
    h = x @ w1_t + b1
    mean = jnp.mean(h, axis=0, keepdims=True)
    var = jnp.mean((h - mean) ** 2, axis=0, keepdims=True)
    h = (h - mean) / jnp.sqrt(var + eps) * gamma + beta
    h = jnp.maximum(h, 0.0)
    for _ in range(power):
        h = adj @ h
    return h @ w2_t + b2


def _reference_mxu(x, adj, w1_t, gamma, beta, w2_t, b2, *, power, eps=_EPS):
    """Reference mirroring the kernels' precision policy exactly:
    bf16 MXU operands / f32 accumulation / bf16 intermediates, folded BN."""
    bf = jnp.bfloat16
    n = x.shape[0]
    a = adj.astype(bf)
    xx = x.astype(bf)
    for _ in range(power):
        xx = jnp.dot(a, xx, preferred_element_type=jnp.float32).astype(bf)
    h = jnp.dot(xx, w1_t.astype(bf), preferred_element_type=jnp.float32)
    mean = jnp.sum(h, axis=0, keepdims=True) / n
    var = jnp.maximum(jnp.sum(h * h, axis=0, keepdims=True) / n - mean * mean, 0.0)
    scale = gamma * jax.lax.rsqrt(var + eps)
    shift = beta - mean * scale
    h = jnp.maximum(h * scale + shift, 0.0)
    z = jnp.dot(h.astype(bf), w2_t.astype(bf),
                preferred_element_type=jnp.float32).astype(bf)
    for s in range(power):
        acc = jnp.dot(a, z, preferred_element_type=jnp.float32)
        z = acc if s == power - 1 else acc.astype(bf)
    return z + b2


if __name__ == "__main__":
    INPUT_DIM, HIDDEN_DIM, OUTPUT_DIM, POWER = 16, 32, 8, 2
    # dropout = 0.5  (identity here; see TODO in _hidden_kernel)

    def build_inputs(n, seed=0):
        key = jax.random.PRNGKey(seed)
        k_x, k_adj, k_w1, k_b1, k_g, k_bt, k_w2, k_b2 = jax.random.split(key, 8)
        x = jax.random.normal(k_x, (n, INPUT_DIM), dtype=jnp.float32)
        # Deterministic dense "normed sparse adjacency": thresholded symmetric
        # adjacency + self loops, D^-1/2 A D^-1/2.
        raw = jax.random.uniform(k_adj, (n, n))
        a_bin = (raw > 0.85).astype(jnp.float32)
        a_sym = jnp.clip(a_bin + a_bin.T, 0.0, 1.0) + jnp.eye(n, dtype=jnp.float32)
        deg = jnp.sum(a_sym, axis=1)
        d_inv_sqrt = 1.0 / jnp.sqrt(deg)
        adj = a_sym * d_inv_sqrt[:, None] * d_inv_sqrt[None, :]
        # Linear weights passed pre-transposed: [in, out].
        w1_t = jax.random.normal(k_w1, (INPUT_DIM, HIDDEN_DIM), jnp.float32) * 0.1
        b1 = jax.random.normal(k_b1, (1, HIDDEN_DIM), jnp.float32) * 0.1
        gamma = 1.0 + 0.1 * jax.random.normal(k_g, (1, HIDDEN_DIM), jnp.float32)
        beta = 0.1 * jax.random.normal(k_bt, (1, HIDDEN_DIM), jnp.float32)
        w2_t = jax.random.normal(k_w2, (HIDDEN_DIM, OUTPUT_DIM), jnp.float32) * 0.1
        b2 = jax.random.normal(k_b2, (1, OUTPUT_DIM), jnp.float32) * 0.1
        return x, adj, w1_t, b1, gamma, beta, w2_t, b2

    configs = [
        dict(n=256, tiles={}),                               # resident fast path
        dict(n=256, tiles=dict(row_tile=128, k_tile=128)),   # k-tiled accumulator path
        dict(n=200, tiles={}),                               # N not a multiple of 128 (padding path)
    ]
    for cfg in configs:
        x, adj, w1_t, b1, gamma, beta, w2_t, b2 = build_inputs(cfg["n"])
        out = ngcn_cell_forward(x, adj, w1_t, b1, gamma, beta, w2_t, b2,
                                power=POWER, **cfg["tiles"])
        out = jax.block_until_ready(out)
        assert out.shape == (cfg["n"], OUTPUT_DIM)

        ref_mxu = _reference_mxu(x, adj, w1_t, gamma, beta, w2_t, b2, power=POWER)
        ref_f32 = _reference_f32(x, adj, w1_t, b1, gamma, beta, w2_t, b2, power=POWER)

        # Tight check vs a reference with the same bf16-operand / f32-accumulate policy.
        assert jnp.allclose(out, ref_mxu, atol=5e-3, rtol=5e-3), \
            f"mismatch vs MXU-policy ref (cfg={cfg})"
        # Looser check vs pure-f32 module semantics (covers bf16 operand rounding
        # through 2*power adjacency products).
        assert jnp.allclose(out, ref_f32, atol=5e-2, rtol=5e-2), \
            f"mismatch vs f32 ref (cfg={cfg})"

    print("KERNEL_OK")
</pallas_src>

<mosaic_0001>
module attributes {stable_mosaic.version = 11 : i64} {
  func.func @_spmm_resident_kernel(%arg0: i32, %arg1: memref<256x256xbf16, #tpu.memory_space<vmem>>, %arg2: memref<256x128xbf16, #tpu.memory_space<vmem>>, %arg3: memref<256x128xbf16, #tpu.memory_space<vmem>>) attributes {dimension_semantics = [#tpu.dimension_semantics<parallel>], iteration_bounds = array<i64: 1>, scalar_prefetch = 0 : i64, scratch_operands = 0 : i64, tpu.core_type = #tpu.core_type<tc>, window_params = [{transform_indices = @transform_0, window_bounds = array<i64: 256, 256>}, {pipeline_mode = #tpu.pipeline_mode<synchronous>, transform_indices = @transform_1, window_bounds = array<i64: 256, 128>}, {transform_indices = @transform_2, window_bounds = array<i64: 256, 128>}]} {
    %c0 = arith.constant 0 : index
    %c0_0 = arith.constant 0 : index
    %0 = vector.load %arg1[%c0, %c0_0] : memref<256x256xbf16, #tpu.memory_space<vmem>>, vector<256x256xbf16>
    %c0_1 = arith.constant 0 : index
    %c0_2 = arith.constant 0 : index
    %1 = vector.load %arg2[%c0_1, %c0_2] : memref<256x128xbf16, #tpu.memory_space<vmem>>, vector<256x128xbf16>
    %cst = arith.constant dense<0.000000e+00> : vector<256x128xf32>
    %2 = tpu.matmul %0, %1, %cst {dimension_numbers = #tpu.dot_dimension_numbers<[1], [0], [0], [1], [0, 0, 1, 1], [], []>} : vector<256x256xbf16>, vector<256x128xbf16>, vector<256x128xf32> -> vector<256x128xf32>
    %3 = arith.truncf %2 : vector<256x128xf32> to vector<256x128xbf16>
    %c0_3 = arith.constant 0 : index
    %c0_4 = arith.constant 0 : index
    %4 = vector.load %arg3[%c0_3, %c0_4] : memref<256x128xbf16, #tpu.memory_space<vmem>>, vector<256x128xbf16>
    tpu.vector_store %arg3[%c0_3, %c0_4], %3 {strides = array<i32>} : memref<256x128xbf16, #tpu.memory_space<vmem>>, vector<256x128xbf16>,
    return
  }
  func.func @transform_0(%arg0: i32) -> (i32, i32) {
    %c0_i32 = arith.constant 0 : i32
    %c0_i32_0 = arith.constant 0 : i32
    return %arg0, %c0_i32 : i32, i32
  }
  func.func @transform_1(%arg0: i32) -> (i32, i32) {
    %c0_i32 = arith.constant 0 : i32
    %c0_i32_0 = arith.constant 0 : i32
    %c0_i32_1 = arith.constant 0 : i32
    return %c0_i32, %c0_i32_0 : i32, i32
  }
  func.func @transform_2(%arg0: i32) -> (i32, i32) {
    %c0_i32 = arith.constant 0 : i32
    %c0_i32_0 = arith.constant 0 : i32
    return %arg0, %c0_i32 : i32, i32
  }
}

</mosaic_0001>

<bundles_post_ra>
// kernel: tpu_custom_call.1
= control target key start
LH: loop header
LB: loop body
LE: loop exit
PB: predicated region body
PF: predicated region fallthrough
CT: control target
= control target key end

     0   :  { %7 = vsyncpa [#allocation3], 0  ;;  %s1242_s0 = inlined_call_operand.hbm [shape: bf16[256,256], index: 0, kind: input, shape index: {}]   ;;  %s1243_s1 = inlined_call_operand.hbm [shape: bf16[256,128], index: 1, kind: input, shape index: {}]   ;;  %s1244_s2 = inlined_call_operand.hbm [shape: bf16[256,128], index: 2, kind: output, shape index: {}]  }
   0x1   :  { %8 = vsyncpa [#allocation6], 0 }
   0x2   :  { %9 = vsyncpa [#allocation4], 0  ;;  %s1178_s9 = smov [#allocation2]   ;;  %s1106_s13 = scalar_lea.hbm %s1242_s0, 4096 }
   0x3   :  { %s15_s10 = sshll.u32 %s1178_s9, 4  ;;  %p1107_p0 = scmp.ne.s32.totalorder %s1242_s0, %s1106_s13  ;;  %s16_s10 = int_to_ptr.vmem [resolvable:$true] %s15_s10 }
   0x4   :  { %p1110_p1 = scmp.lt.u32.totalorder %s1106_s13, %s1242_s0 }
   0x6   :  { %p1112_p2 = pnand %p1110_p1, %p1107_p0 }
   0x8   :  { %1115 = shalt.err (!%p1112_p2)
}
   0x9   :  { %s1116_s18 = scalar_lea.vmem %s16_s10, 4096  ;;  %p1121_p4 = scmp.lt.s32.totalorder %s16_s10, %s16_s10 }
   0xa   :  { %p1117_p3 = scmp.ne.s32.totalorder %s16_s10, %s1116_s18  ;;  %p1122_p5 = scmp.lt.s32.totalorder %s1116_s18, %s1116_s18 }
   0xc   :  { %p1123_p6 = por %p1122_p5, %p1121_p4 }
   0xe   :  { %p1124_p7 = pnand %p1123_p6, %p1117_p3 }
  0x10   :  { %1127 = shalt.err (!%p1124_p7)
}
  0x11   :  { %s1179_s19 = smov 128   ;;  %s1180_s20 = smov 8  }
  0x12   :  { %21 = dma.hbm_to_vmem [thread:$0]  %s1242_s0, 4096, %s16_s10, [#allocation3], %s1179_s19, %s1179_s19, %s1180_s20  }
  0x13   :  { %s1181_s23 = smov [#allocation5]   ;;  %s1128_s27 = scalar_lea.hbm %s1243_s1, 2048 }
  0x14   :  { %s27_s24 = sshll.u32 %s1181_s23, 4  ;;  %p1129_p8 = scmp.ne.s32.totalorder %s1243_s1, %s1128_s27  ;;  %s28_s24 = int_to_ptr.vmem [resolvable:$true] %s27_s24 }
  0x15   :  { %p1132_p9 = scmp.lt.u32.totalorder %s1128_s27, %s1243_s1 }
  0x17   :  { %p1134_p10 = pnand %p1132_p9, %p1129_p8 }
  0x19   :  { %1137 = shalt.err (!%p1134_p10)
}
  0x1a   :  { %s1138_s4 = scalar_lea.vmem %s28_s24, 2048  ;;  %p1143_p12 = scmp.lt.s32.totalorder %s28_s24, %s28_s24 }
  0x1b   :  { %p1139_p11 = scmp.ne.s32.totalorder %s28_s24, %s1138_s4  ;;  %p1144_p13 = scmp.lt.s32.totalorder %s1138_s4, %s1138_s4 }
  0x1d   :  { %p1145_p0 = por %p1144_p13, %p1143_p12 }
  0x1f   :  { %p1146_p1 = pnand %p1145_p0, %p1139_p11 }
  0x21   :  { %1149 = shalt.err (!%p1146_p1)
}
  0x22   :  { %s1182_s0 = smov 64   ;;  %s1183_s5 = smov 4  }
  0x23   :  { %33 = dma.hbm_to_vmem [thread:$0]  %s1243_s1, 2048, %s28_s24, [#allocation6], %s1182_s0, %s1182_s0, %s1183_s5  }
  0x24   :  { %1172 = dma.done.wait [#allocation3], 4096  }
  0x25   :  { %1173 = vsyncadd [#allocation3], 4294963200 }
  0x26   :  { %1174 = dma.done.wait [#allocation6], 2048  }
  0x27   :  { %1175 = vsyncadd [#allocation6], 4294965248  ;;  %v1042_v0 = vld [vmem:[#allocation5 + $0x40] sm:$0xff]   ;;  %v1044_v2 = vld [vmem:[#allocation5 + $0x48] sm:$0xff]   ;;  %s1184_s1 = smov [#allocation7]  }
  0x28   :  { %v1043_v1 = vld [vmem:[#allocation5] sm:$0xff]   ;;  %907 = vmatprep.subr.bf16.mxu0 %v1042_v0  ;;  %1019 = vmatprep.subr.bf16.mxu1 %v1042_v0  ;;  %v1045_v3 = vld [vmem:[#allocation5 + $0x8] sm:$0xff]   ;;  %v1046_v4 = vld [vmem:[#allocation5 + $0x50] sm:$0xff]   ;;  %s687_s8 = sshll.u32 %s1184_s1, 4  ;;  %s688_s8 = int_to_ptr.vmem [resolvable:$true] %s687_s8 }
  0x29   :  { %908 = vmatpush3.bf16.msra.mxu0 %v1043_v1  ;;  %1027 = vmatpush3.bf16.msra.mxu1 %v1043_v1  ;;  %v1047_v5 = vld [vmem:[#allocation5 + $0x10] sm:$0xff]   ;;  %v1048_v6 = vld [vmem:[#allocation5 + $0x58] sm:$0xff]   ;;  %v1050_v8 = vld [vmem:[#allocation5 + $0x60] sm:$0xff]   ;;  %s1150_s9 = scalar_lea.vmem %s688_s8, 2048  ;;  %p1155_p3 = scmp.lt.s32.totalorder %s688_s8, %s688_s8 }
  0x2a   :  { %909 = vmatprep.subr.bf16.mxu0 %v1044_v2  ;;  %1020 = vmatprep.subr.bf16.mxu1 %v1044_v2  ;;  %v1049_v7 = vld [vmem:[#allocation5 + $0x18] sm:$0xff]   ;;  %v1051_v9 = vld [vmem:[#allocation5 + $0x20] sm:$0xff]   ;;  %v1052_v10 = vld [vmem:[#allocation5 + $0x68] sm:$0xff]   ;;  %p1151_p2 = scmp.ne.s32.totalorder %s688_s8, %s1150_s9  ;;  %p1156_p4 = scmp.lt.s32.totalorder %s1150_s9, %s1150_s9 }
  0x2b   :  { %v1060_v11 = vld [vmem:[#allocation2 + $0x4] ss:$8 sps:$4 sm:$0xff]   ;;  %v1054_v14 = vld [vmem:[#allocation5 + $0x70] sm:$0xff]   ;;  %v1056_v16 = vld [vmem:[#allocation5 + $0x78] sm:$0xff]  }
  0x2c   :  { %v1063_v12 = vld [vmem:[#allocation2 + $0x84] ss:$8 sps:$4 sm:$0xff]   ;;  %393 = vmatprep.mubr.bf16.mxu0 %v1060_v11  ;;  %v1055_v15 = vld [vmem:[#allocation5 + $0x30] sm:$0xff]   ;;  %v1057_v17 = vld [vmem:[#allocation5 + $0x38] sm:$0xff]   ;;  %p1157_p5 = por %p1156_p4, %p1155_p3 }
  0x2d   :  { %910 = vmatpush3.bf16.msra.mxu0 %v1045_v3  ;;  %1028 = vmatpush3.bf16.msra.mxu1 %v1045_v3  ;;  %v1053_v13 = vld [vmem:[#allocation5 + $0x28] sm:$0xff]   ;;  %v1064_v20 = vld [vmem:[#allocation2 + $0x14] ss:$8 sps:$4 sm:$0xff]   ;;  %v1068_v22 = vld [vmem:[#allocation2 + $0x10] ss:$8 sps:$4 sm:$0xff]  }
  0x2e   :  { %911 = vmatprep.subr.bf16.mxu0 %v1046_v4  ;;  %1021 = vmatprep.subr.bf16.mxu1 %v1046_v4  ;;  %v1058_v18 = vld [vmem:[#allocation2] ss:$8 sps:$4 sm:$0xff]   ;;  %v1066_v21 = vld [vmem:[#allocation2 + $0x94] ss:$8 sps:$4 sm:$0xff]   ;;  %v1069_v23 = vld [vmem:[#allocation2 + $0x90] ss:$8 sps:$4 sm:$0xff]   ;;  %p1158_p6 = pnand %p1157_p5, %p1151_p2 }
  0x2f   :  { %457 = vmatprep.mubr.bf16.mxu1 %v1063_v12  ;;  %v1061_v19 = vld [vmem:[#allocation2 + $0x80] ss:$8 sps:$4 sm:$0xff]   ;;  %v1070_v24 = vld [vmem:[#allocation2 + $0x24] ss:$8 sps:$4 sm:$0xff]   ;;  %v1076_v28 = vld [vmem:[#allocation2 + $0x34] ss:$8 sps:$4 sm:$0xff]  }
  0x30   :  { %v1072_v25 = vld [vmem:[#allocation2 + $0xa4] ss:$8 sps:$4 sm:$0xff]   ;;  %v1074_v26 = vld [vmem:[#allocation2 + $0x20] ss:$8 sps:$4 sm:$0xff]   ;;  %v1078_v29 = vld [vmem:[#allocation2 + $0xb4] ss:$8 sps:$4 sm:$0xff]  }
  0x31   :  { %912 = vmatpush3.bf16.msra.mxu0 %v1047_v5  ;;  %1029 = vmatpush3.bf16.msra.mxu1 %v1047_v5  ;;  %v1075_v27 = vld [vmem:[#allocation2 + $0xa0] ss:$8 sps:$4 sm:$0xff]   ;;  %v1080_v30 = vld [vmem:[#allocation2 + $0x30] ss:$8 sps:$4 sm:$0xff]   ;;  %v1082_v32 = vld [vmem:[#allocation2 + $0x44] ss:$8 sps:$4 sm:$0xff]  }
  0x32   :  { %913 = vmatprep.subr.bf16.mxu0 %v1048_v6  ;;  %1022 = vmatprep.subr.bf16.mxu1 %v1048_v6  ;;  %v1081_v31 = vld [vmem:[#allocation2 + $0xb0] ss:$8 sps:$4 sm:$0xff]   ;;  %v1084_v33 = vld [vmem:[#allocation2 + $0xc4] ss:$8 sps:$4 sm:$0xff]   ;;  %v1086_v34 = vld [vmem:[#allocation2 + $0x40] ss:$8 sps:$4 sm:$0xff]  }
  0x33   :  { %v1087_v35 = vld [vmem:[#allocation2 + $0xc0] ss:$8 sps:$4 sm:$0xff]   ;;  %v1088_v36 = vld [vmem:[#allocation2 + $0x54] ss:$8 sps:$4 sm:$0xff]   ;;  %v1092_v38 = vld [vmem:[#allocation2 + $0x50] ss:$8 sps:$4 sm:$0xff]  }
  0x34   :  { %v1090_v37 = vld [vmem:[#allocation2 + $0xd4] ss:$8 sps:$4 sm:$0xff]   ;;  %v1093_v39 = vld [vmem:[#allocation2 + $0xd0] ss:$8 sps:$4 sm:$0xff]   ;;  %v1094_v40 = vld [vmem:[#allocation2 + $0x64] ss:$8 sps:$4 sm:$0xff]  }
  0x35   :  { %914 = vmatpush3.bf16.msra.mxu0 %v1049_v7  ;;  %1030 = vmatpush3.bf16.msra.mxu1 %v1049_v7  ;;  %v1096_v41 = vld [vmem:[#allocation2 + $0xe4] ss:$8 sps:$4 sm:$0xff]   ;;  %v1098_v42 = vld [vmem:[#allocation2 + $0x60] ss:$8 sps:$4 sm:$0xff]   ;;  %v1100_v44 = vld [vmem:[#allocation2 + $0x74] ss:$8 sps:$4 sm:$0xff]  }
  0x36   :  { %915 = vmatprep.subr.bf16.mxu0 %v1050_v8  ;;  %1023 = vmatprep.subr.bf16.mxu1 %v1050_v8  ;;  %v1099_v43 = vld [vmem:[#allocation2 + $0xe0] ss:$8 sps:$4 sm:$0xff]   ;;  %v1102_v45 = vld [vmem:[#allocation2 + $0xf4] ss:$8 sps:$4 sm:$0xff]   ;;  %v1104_v46 = vld [vmem:[#allocation2 + $0x70] ss:$8 sps:$4 sm:$0xff]  }
  0x37   :  { %v1105_v47 = vld [vmem:[#allocation2 + $0xf0] ss:$8 sps:$4 sm:$0xff]  }
  0x39   :  { %916 = vmatpush3.bf16.msra.mxu0 %v1051_v9  ;;  %1031 = vmatpush3.bf16.msra.mxu1 %v1051_v9 }
  0x3a   :  { %917 = vmatprep.subr.bf16.mxu0 %v1052_v10  ;;  %1024 = vmatprep.subr.bf16.mxu1 %v1052_v10 }
  0x3d   :  { %918 = vmatpush3.bf16.msra.mxu0 %v1053_v13  ;;  %1032 = vmatpush3.bf16.msra.mxu1 %v1053_v13 }
  0x3e   :  { %919 = vmatprep.subr.bf16.mxu0 %v1054_v14  ;;  %1025 = vmatprep.subr.bf16.mxu1 %v1054_v14 }
  0x41   :  { %920 = vmatpush3.bf16.msra.mxu0 %v1055_v15  ;;  %1033 = vmatpush3.bf16.msra.mxu1 %v1055_v15 }
  0x42   :  { %921 = vmatprep.subr.bf16.mxu0 %v1056_v16  ;;  %1026 = vmatprep.subr.bf16.mxu1 %v1056_v16 }
  0x45   :  { %922 = vmatpush3.bf16.msra.mxu0 %v1057_v17  ;;  %1034 = vmatpush3.bf16.msra.mxu1 %v1057_v17 }
  0x48   :  { %394 = vmatmul.mubr.bf16.vlgmr.msra.gmra.mrb[0].mxu0 %v1058_v18  ;;  %458 = vmatmul.mubr.bf16.vlgmr.msra.gmra.mrb[0].mxu1 %v1061_v19 }
  0x49   :  { %401 = vmatprep.mubr.bf16.mxu0 %v1064_v20  ;;  %465 = vmatprep.mubr.bf16.mxu1 %v1066_v21 }
  0x50   :  { %402 = vmatmul.mubr.bf16.gmra.mrb[4].mxu0 %v1068_v22  ;;  %466 = vmatmul.mubr.bf16.gmra.mrb[4].mxu1 %v1069_v23 }
  0x51   :  { %409 = vmatprep.mubr.bf16.mxu0 %v1070_v24  ;;  %473 = vmatprep.mubr.bf16.mxu1 %v1072_v25 }
  0x58   :  { %410 = vmatmul.mubr.bf16.gmra.mrb[8].mxu0 %v1074_v26  ;;  %474 = vmatmul.mubr.bf16.gmra.mrb[8].mxu1 %v1075_v27 }
  0x59   :  { %417 = vmatprep.mubr.bf16.mxu0 %v1076_v28  ;;  %481 = vmatprep.mubr.bf16.mxu1 %v1078_v29 }
  0x60   :  { %418 = vmatmul.mubr.bf16.gmra.mrb[12].mxu0 %v1080_v30  ;;  %482 = vmatmul.mubr.bf16.gmra.mrb[12].mxu1 %v1081_v31 }
  0x61   :  { %425 = vmatprep.mubr.bf16.mxu0 %v1082_v32  ;;  %489 = vmatprep.mubr.bf16.mxu1 %v1084_v33 }
  0x68   :  { %426 = vmatmul.mubr.bf16.gmra.mrb[16].mxu0 %v1086_v34  ;;  %490 = vmatmul.mubr.bf16.gmra.mrb[16].mxu1 %v1087_v35 }
  0x69   :  { %433 = vmatprep.mubr.bf16.mxu0 %v1088_v36  ;;  %497 = vmatprep.mubr.bf16.mxu1 %v1090_v37 }
  0x70   :  { %434 = vmatmul.mubr.bf16.gmra.mrb[20].mxu0 %v1092_v38  ;;  %498 = vmatmul.mubr.bf16.gmra.mrb[20].mxu1 %v1093_v39 }
  0x71   :  { %441 = vmatprep.mubr.bf16.mxu0 %v1094_v40  ;;  %505 = vmatprep.mubr.bf16.mxu1 %v1096_v41 }
  0x78   :  { %442 = vmatmul.mubr.bf16.gmra.mrb[24].mxu0 %v1098_v42  ;;  %506 = vmatmul.mubr.bf16.gmra.mrb[24].mxu1 %v1099_v43 }
  0x79   :  { %449 = vmatprep.mubr.bf16.mxu0 %v1100_v44  ;;  %513 = vmatprep.mubr.bf16.mxu1 %v1102_v45 }
  0x80   :  { %450 = vmatmul.mubr.bf16.gmra.mrb[28].mxu0 %v1104_v46  ;;  %514 = vmatmul.mubr.bf16.gmra.mrb[28].mxu1 %v1105_v47 }
 0x11b   :  { %v923_v48 = vpop.f32.mrb[0].mxu0  ;;  %v971_v49 = vpop.f32.mrb[0].mxu1 }
 0x11c   :  { %v924_v50 = vpop.f32.mrb[1].mxu0  ;;  %v972_v51 = vpop.f32.mrb[1].mxu1 }
 0x11d   :  { %v925_v52 = vadd.f32 %v924_v50, %v923_v48  ;;  %v973_v53 = vadd.f32 %v972_v51, %v971_v49  ;;  %v926_v54 = vpop.f32.mrb[2].mxu0  ;;  %v974_v55 = vpop.f32.mrb[2].mxu1 }
 0x11e   :  { %v927_v56 = vpop.f32.mrb[3].mxu0  ;;  %v975_v57 = vpop.f32.mrb[3].mxu1 }
 0x11f   :  { %v928_v58 = vadd.f32 %v927_v56, %v926_v54  ;;  %v976_v59 = vadd.f32 %v975_v57, %v974_v55 }
 0x121   :  { %v815_v60 = vpack.c.bf16 %v928_v58, %v925_v52  ;;  %v855_v61 = vpack.c.bf16 %v976_v59, %v973_v53 }
 0x123   :  { %816 = vst [vmem:[#allocation7] sm:$0xff] %v815_v60   ;;  %899 = vst [vmem:[#allocation7 + $0x40] sm:$0xff] %v855_v61   ;;  %v929_v62 = vpop.f32.mrb[4].mxu0  ;;  %v977_v63 = vpop.f32.mrb[4].mxu1 }
 0x124   :  { %v930_v0 = vpop.f32.mrb[5].mxu0  ;;  %v978_v1 = vpop.f32.mrb[5].mxu1 }
 0x125   :  { %v931_v2 = vadd.f32 %v930_v0, %v929_v62  ;;  %v979_v3 = vadd.f32 %v978_v1, %v977_v63  ;;  %v932_v4 = vpop.f32.mrb[6].mxu0  ;;  %v980_v5 = vpop.f32.mrb[6].mxu1 }
 0x126   :  { %v933_v6 = vpop.f32.mrb[7].mxu0  ;;  %v981_v7 = vpop.f32.mrb[7].mxu1 }
 0x127   :  { %v934_v8 = vadd.f32 %v933_v6, %v932_v4  ;;  %v982_v9 = vadd.f32 %v981_v7, %v980_v5 }
 0x129   :  { %v820_v10 = vpack.c.bf16 %v934_v8, %v931_v2  ;;  %v860_v11 = vpack.c.bf16 %v982_v9, %v979_v3 }
 0x12b   :  { %892 = vst [vmem:[#allocation7 + $0x8] sm:$0xff] %v820_v10   ;;  %900 = vst [vmem:[#allocation7 + $0x48] sm:$0xff] %v860_v11   ;;  %v935_v12 = vpop.f32.mrb[8].mxu0  ;;  %v983_v13 = vpop.f32.mrb[8].mxu1 }
 0x12c   :  { %v936_v14 = vpop.f32.mrb[9].mxu0  ;;  %v984_v15 = vpop.f32.mrb[9].mxu1 }
 0x12d   :  { %v937_v16 = vadd.f32 %v936_v14, %v935_v12  ;;  %v985_v17 = vadd.f32 %v984_v15, %v983_v13  ;;  %v938_v18 = vpop.f32.mrb[10].mxu0  ;;  %v986_v19 = vpop.f32.mrb[10].mxu1 }
 0x12e   :  { %v939_v20 = vpop.f32.mrb[11].mxu0  ;;  %v987_v21 = vpop.f32.mrb[11].mxu1 }
 0x12f   :  { %v940_v22 = vadd.f32 %v939_v20, %v938_v18  ;;  %v988_v23 = vadd.f32 %v987_v21, %v986_v19 }
 0x131   :  { %v825_v24 = vpack.c.bf16 %v940_v22, %v937_v16  ;;  %v865_v25 = vpack.c.bf16 %v988_v23, %v985_v17 }
 0x133   :  { %893 = vst [vmem:[#allocation7 + $0x10] sm:$0xff] %v825_v24   ;;  %901 = vst [vmem:[#allocation7 + $0x50] sm:$0xff] %v865_v25   ;;  %v941_v26 = vpop.f32.mrb[12].mxu0  ;;  %v989_v27 = vpop.f32.mrb[12].mxu1 }
 0x134   :  { %v942_v28 = vpop.f32.mrb[13].mxu0  ;;  %v990_v29 = vpop.f32.mrb[13].mxu1 }
 0x135   :  { %v943_v30 = vadd.f32 %v942_v28, %v941_v26  ;;  %v991_v31 = vadd.f32 %v990_v29, %v989_v27  ;;  %v944_v32 = vpop.f32.mrb[14].mxu0  ;;  %v992_v33 = vpop.f32.mrb[14].mxu1 }
 0x136   :  { %v945_v34 = vpop.f32.mrb[15].mxu0  ;;  %v993_v35 = vpop.f32.mrb[15].mxu1 }
 0x137   :  { %v946_v36 = vadd.f32 %v945_v34, %v944_v32  ;;  %v994_v37 = vadd.f32 %v993_v35, %v992_v33 }
 0x139   :  { %v830_v38 = vpack.c.bf16 %v946_v36, %v943_v30  ;;  %v870_v39 = vpack.c.bf16 %v994_v37, %v991_v31 }
 0x13b   :  { %894 = vst [vmem:[#allocation7 + $0x18] sm:$0xff] %v830_v38   ;;  %902 = vst [vmem:[#allocation7 + $0x58] sm:$0xff] %v870_v39   ;;  %v947_v40 = vpop.f32.mrb[16].mxu0  ;;  %v995_v41 = vpop.f32.mrb[16].mxu1 }
 0x13c   :  { %v948_v42 = vpop.f32.mrb[17].mxu0  ;;  %v996_v43 = vpop.f32.mrb[17].mxu1 }
 0x13d   :  { %v949_v44 = vadd.f32 %v948_v42, %v947_v40  ;;  %v997_v45 = vadd.f32 %v996_v43, %v995_v41  ;;  %v950_v46 = vpop.f32.mrb[18].mxu0  ;;  %v998_v47 = vpop.f32.mrb[18].mxu1 }
 0x13e   :  { %v951_v48 = vpop.f32.mrb[19].mxu0  ;;  %v999_v49 = vpop.f32.mrb[19].mxu1 }
 0x13f   :  { %v952_v50 = vadd.f32 %v951_v48, %v950_v46  ;;  %v1000_v51 = vadd.f32 %v999_v49, %v998_v47 }
 0x141   :  { %v835_v52 = vpack.c.bf16 %v952_v50, %v949_v44  ;;  %v875_v53 = vpack.c.bf16 %v1000_v51, %v997_v45 }
 0x143   :  { %895 = vst [vmem:[#allocation7 + $0x20] sm:$0xff] %v835_v52   ;;  %903 = vst [vmem:[#allocation7 + $0x60] sm:$0xff] %v875_v53   ;;  %v953_v54 = vpop.f32.mrb[20].mxu0  ;;  %v1001_v55 = vpop.f32.mrb[20].mxu1 }
 0x144   :  { %v954_v56 = vpop.f32.mrb[21].mxu0  ;;  %v1002_v57 = vpop.f32.mrb[21].mxu1 }
 0x145   :  { %v955_v58 = vadd.f32 %v954_v56, %v953_v54  ;;  %v1003_v59 = vadd.f32 %v1002_v57, %v1001_v55  ;;  %v956_v60 = vpop.f32.mrb[22].mxu0  ;;  %v1004_v61 = vpop.f32.mrb[22].mxu1 }
 0x146   :  { %v957_v62 = vpop.f32.mrb[23].mxu0  ;;  %v1005_v63 = vpop.f32.mrb[23].mxu1 }
 0x147   :  { %v958_v0 = vadd.f32 %v957_v62, %v956_v60  ;;  %v1006_v1 = vadd.f32 %v1005_v63, %v1004_v61 }
 0x149   :  { %v840_v2 = vpack.c.bf16 %v958_v0, %v955_v58  ;;  %v880_v3 = vpack.c.bf16 %v1006_v1, %v1003_v59 }
 0x14b   :  { %896 = vst [vmem:[#allocation7 + $0x28] sm:$0xff] %v840_v2   ;;  %904 = vst [vmem:[#allocation7 + $0x68] sm:$0xff] %v880_v3   ;;  %v959_v4 = vpop.f32.mrb[24].mxu0  ;;  %v1007_v5 = vpop.f32.mrb[24].mxu1 }
 0x14c   :  { %v960_v6 = vpop.f32.mrb[25].mxu0  ;;  %v1008_v7 = vpop.f32.mrb[25].mxu1 }
 0x14d   :  { %v961_v8 = vadd.f32 %v960_v6, %v959_v4  ;;  %v1009_v9 = vadd.f32 %v1008_v7, %v1007_v5  ;;  %v962_v10 = vpop.f32.mrb[26].mxu0  ;;  %v1010_v11 = vpop.f32.mrb[26].mxu1 }
 0x14e   :  { %v963_v12 = vpop.f32.mrb[27].mxu0  ;;  %v1011_v13 = vpop.f32.mrb[27].mxu1 }
 0x14f   :  { %v964_v14 = vadd.f32 %v963_v12, %v962_v10  ;;  %v1012_v15 = vadd.f32 %v1011_v13, %v1010_v11 }
 0x151   :  { %v845_v16 = vpack.c.bf16 %v964_v14, %v961_v8  ;;  %v885_v17 = vpack.c.bf16 %v1012_v15, %v1009_v9 }
 0x153   :  { %897 = vst [vmem:[#allocation7 + $0x30] sm:$0xff] %v845_v16   ;;  %905 = vst [vmem:[#allocation7 + $0x70] sm:$0xff] %v885_v17   ;;  %v965_v18 = vpop.f32.mrb[28].mxu0  ;;  %v1013_v19 = vpop.f32.mrb[28].mxu1 }
 0x154   :  { %v966_v20 = vpop.f32.mrb[29].mxu0  ;;  %v1014_v21 = vpop.f32.mrb[29].mxu1 }
 0x155   :  { %v967_v22 = vadd.f32 %v966_v20, %v965_v18  ;;  %v1015_v23 = vadd.f32 %v1014_v21, %v1013_v19  ;;  %v968_v24 = vpop.f32.mrb[30].mxu0  ;;  %v1016_v25 = vpop.f32.mrb[30].mxu1 }
 0x156   :  { %v969_v26 = vpop.f32.mrb[31].mxu0  ;;  %v1017_v27 = vpop.f32.mrb[31].mxu1 }
 0x157   :  { %v970_v28 = vadd.f32 %v969_v26, %v968_v24  ;;  %v1018_v29 = vadd.f32 %v1017_v27, %v1016_v25 }
 0x159   :  { %v850_v30 = vpack.c.bf16 %v970_v28, %v967_v22  ;;  %v890_v31 = vpack.c.bf16 %v1018_v29, %v1015_v23 }
 0x15b   :  { %898 = vst [vmem:[#allocation7 + $0x38] sm:$0xff] %v850_v30   ;;  %906 = vst [vmem:[#allocation7 + $0x78] sm:$0xff] %v890_v31  }
 0x15c   :  { %1161 = shalt.err (!%p1158_p6)
}
 0x15d   :  { %s1162_s12 = scalar_lea.hbm %s1244_s2, 2048 }
 0x15e   :  { %p1163_p7 = scmp.ne.s32.totalorder %s1244_s2, %s1162_s12  ;;  %p1166_p8 = scmp.lt.u32.totalorder %s1162_s12, %s1244_s2 }
 0x160   :  { %p1168_p9 = pnand %p1166_p8, %p1163_p7 }
 0x162   :  { %1171 = shalt.err (!%p1168_p9)
}
 0x163   :  { %693 = dma.vmem_to_hbm [thread:$0]  %s688_s8, 2048, %s1244_s2, [#allocation4], %s1182_s0, %s1182_s0, %s1183_s5  }
 0x164   :  { %1176 = dma.done.wait [#allocation4], 2048  }
 0x165   :  { %1177 = vsyncadd [#allocation4], 4294965248 }
 0x166   :  { %697 = vsyncpa [#allocation3], 1 }
 0x167   :  { %698 = vsyncpa [#allocation6], 1 }
 0x168   :  { %699 = vsyncpa [#allocation4], 1 }

</bundles_post_ra>
